<compile_context>
chip_gen: v5e
topology: v5e:2x2
jax: 0.10.0
libtpu: 0.0.40
codegen_flags: <defaults>
</compile_context>

<pallas_src>
import functools

import jax
import jax.numpy as jnp
from jax.experimental import pallas as pl
from jax.experimental.pallas import tpu as pltpu

LOG_STD_MAX = 2.0
LOG_STD_MIN = -20.0


def _actor_kernel(x_ref, w1_ref, b1_ref, w2_ref, b2_ref, wh_ref, bh_ref,
                  out_ref, *, action_dim):
    x = x_ref[...]                                               # (B, S)

    # fc1 + ReLU
    h1 = jnp.dot(x, w1_ref[...], preferred_element_type=jnp.float32)
    h1 = jnp.maximum(h1 + b1_ref[...], 0.0)                      # (B, H)

    # fc2 + ReLU
    h2 = jnp.dot(h1, w2_ref[...], preferred_element_type=jnp.float32)
    h2 = jnp.maximum(h2 + b2_ref[...], 0.0)                      # (B, H)

    # fused heads: columns [0, A) = mean, [A, 2A) = log_std
    heads = jnp.dot(h2, wh_ref[...], preferred_element_type=jnp.float32)
    heads = heads + bh_ref[...]                                  # (B, 2A)

    # Clamp only the log_std half without lane slice/concat: pure VPU
    # elementwise select on the full tile.
    col = jax.lax.broadcasted_iota(jnp.int32, heads.shape, 1)
    clipped = jnp.clip(heads, LOG_STD_MIN, LOG_STD_MAX)
    out = jnp.where(col >= action_dim, clipped, heads)

    out_ref[...] = out.astype(out_ref.dtype)


def actor_forward(state, params, *, batch_tile=None):
    """Pallas forward. state: (B, state_dim) f32 -> (mean, log_std)."""
    w1, b1, w2, b2, wh, bh = params
    B, S = state.shape
    H = w1.shape[1]
    two_a = wh.shape[1]
    A = two_a // 2

    kernel = functools.partial(_actor_kernel, action_dim=A)
    out_shape = jax.ShapeDtypeStruct((B, two_a), jnp.float32)

    if batch_tile is not None and B > batch_tile and B % batch_tile == 0:
        # Batch-tiled path: weights stay VMEM-resident (block index (0,0)
        # across the grid); batch axis is "parallel" for megacore sharding.
        TB = batch_tile
        out = pl.pallas_call(
            kernel,
            out_shape=out_shape,
            grid=(B // TB,),
            in_specs=[
                pl.BlockSpec((TB, S), lambda i: (i, 0)),
                pl.BlockSpec((S, H), lambda i: (0, 0)),
                pl.BlockSpec((1, H), lambda i: (0, 0)),
                pl.BlockSpec((H, H), lambda i: (0, 0)),
                pl.BlockSpec((1, H), lambda i: (0, 0)),
                pl.BlockSpec((H, two_a), lambda i: (0, 0)),
                pl.BlockSpec((1, two_a), lambda i: (0, 0)),
            ],
            out_specs=pl.BlockSpec((TB, two_a), lambda i: (i, 0)),
            compiler_params=pltpu.CompilerParams(
                dimension_semantics=("parallel",)),
        )(state, w1, b1, w2, b2, wh, bh)
    else:
        # Single-block path: no grid, no per-step pipeline machinery; every
        # operand is one full VMEM-resident block.
        vmem = pl.BlockSpec(memory_space=pltpu.MemorySpace.VMEM)
        out = pl.pallas_call(
            kernel,
            out_shape=out_shape,
            in_specs=[vmem] * 7,
            out_specs=vmem,
        )(state, w1, b1, w2, b2, wh, bh)

    return out[:, :A], out[:, A:]


def init_actor_params(key, state_dim, action_dim, hidden_dim=256):
    """Init mirroring nn.Linear's U(-1/sqrt(fan_in), 1/sqrt(fan_in)).

    Weights are stored (in_features, out_features); the mean / log_std head
    weights and biases are fused into a single (H, 2A) / (1, 2A) pair here,
    once, so the kernel does a single head matmul.
    """
    def linear(k, fan_in, fan_out):
        kw, kb = jax.random.split(k)
        bound = 1.0 / jnp.sqrt(fan_in)
        w = jax.random.uniform(kw, (fan_in, fan_out), jnp.float32, -bound, bound)
        b = jax.random.uniform(kb, (1, fan_out), jnp.float32, -bound, bound)
        return w, b

    k1, k2, k3, k4 = jax.random.split(key, 4)
    w1, b1 = linear(k1, state_dim, hidden_dim)
    w2, b2 = linear(k2, hidden_dim, hidden_dim)
    wm, bm = linear(k3, hidden_dim, action_dim)
    wl, bl = linear(k4, hidden_dim, action_dim)
    wh = jnp.concatenate([wm, wl], axis=1)   # (H, 2A): [mean | log_std]
    bh = jnp.concatenate([bm, bl], axis=1)   # (1, 2A)
    return (w1, b1, w2, b2, wh, bh)


def actor_forward_ref(state, params):
    """Plain-JAX reference for correctness check."""
    w1, b1, w2, b2, wh, bh = params
    A = wh.shape[1] // 2
    x = jnp.maximum(state @ w1 + b1, 0.0)
    x = jnp.maximum(x @ w2 + b2, 0.0)
    heads = x @ wh + bh
    mean = heads[:, :A]
    log_std = jnp.clip(heads[:, A:], LOG_STD_MIN, LOG_STD_MAX)
    return mean, log_std


# TODO(synk): Actor.sample() (Normal rsample + tanh log-prob) is host-side
# distribution logic, not part of the forward-pass spec; not implemented here.

if __name__ == "__main__":
    key = jax.random.PRNGKey(0)
    k_params, k_state, k_big = jax.random.split(key, 3)

    batch = 8
    state_dim = 16
    action_dim = 8
    hidden_dim = 32

    params = init_actor_params(k_params, state_dim, action_dim, hidden_dim)
    state = jax.random.normal(k_state, (batch, state_dim), jnp.float32)

    # Small single-block path.
    mean, log_std = actor_forward(state, params)
    jax.block_until_ready((mean, log_std))
    mean_ref, log_std_ref = actor_forward_ref(state, params)
    assert mean.shape == (batch, action_dim)
    assert log_std.shape == (batch, action_dim)
    assert jnp.allclose(mean, mean_ref, atol=1e-5, rtol=1e-5)
    assert jnp.allclose(log_std, log_std_ref, atol=1e-5, rtol=1e-5)

    # Batch-tiled path (weights resident across tiles, parallel batch axis).
    big_batch = 256
    state_big = jax.random.normal(k_big, (big_batch, state_dim), jnp.float32)
    mean_b, log_std_b = actor_forward(state_big, params, batch_tile=128)
    jax.block_until_ready((mean_b, log_std_b))
    mean_b_ref, log_std_b_ref = actor_forward_ref(state_big, params)
    assert jnp.allclose(mean_b, mean_b_ref, atol=1e-5, rtol=1e-5)
    assert jnp.allclose(log_std_b, log_std_b_ref, atol=1e-5, rtol=1e-5)

    print("KERNEL_OK")
</pallas_src>

<mosaic_0001>
module attributes {stable_mosaic.version = 11 : i64} {
  func.func @_actor_kernel(%arg0: memref<8x16xf32, #tpu.memory_space<vmem>>, %arg1: memref<16x32xf32, #tpu.memory_space<vmem>>, %arg2: memref<1x32xf32, #tpu.memory_space<vmem>>, %arg3: memref<32x32xf32, #tpu.memory_space<vmem>>, %arg4: memref<1x32xf32, #tpu.memory_space<vmem>>, %arg5: memref<32x16xf32, #tpu.memory_space<vmem>>, %arg6: memref<1x16xf32, #tpu.memory_space<vmem>>, %arg7: memref<8x16xf32, #tpu.memory_space<vmem>>) attributes {dimension_semantics = [], scalar_prefetch = 0 : i64, scratch_operands = 0 : i64, tpu.core_type = #tpu.core_type<tc>} {
    %c0 = arith.constant 0 : index
    %c0_0 = arith.constant 0 : index
    %0 = vector.load %arg0[%c0, %c0_0] : memref<8x16xf32, #tpu.memory_space<vmem>>, vector<8x16xf32>
    %c0_1 = arith.constant 0 : index
    %c0_2 = arith.constant 0 : index
    %1 = vector.load %arg1[%c0_1, %c0_2] : memref<16x32xf32, #tpu.memory_space<vmem>>, vector<16x32xf32>
    %cst = arith.constant dense<0.000000e+00> : vector<8x32xf32>
    %2 = tpu.matmul %0, %1, %cst {dimension_numbers = #tpu.dot_dimension_numbers<[1], [0], [0], [1], [0, 0, 1, 1], [], []>} : vector<8x16xf32>, vector<16x32xf32>, vector<8x32xf32> -> vector<8x32xf32>
    %c0_3 = arith.constant 0 : index
    %c0_4 = arith.constant 0 : index
    %3 = vector.load %arg2[%c0_3, %c0_4] : memref<1x32xf32, #tpu.memory_space<vmem>>, vector<1x32xf32>
    %4 = vector.broadcast %3 : vector<1x32xf32> to vector<8x32xf32>
    %5 = arith.addf %2, %4 : vector<8x32xf32>
    %cst_5 = arith.constant 0.000000e+00 : f32
    %6 = vector.broadcast %cst_5 : f32 to vector<8x32xf32>
    %7 = arith.maximumf %5, %6 : vector<8x32xf32>
    %c0_6 = arith.constant 0 : index
    %c0_7 = arith.constant 0 : index
    %8 = vector.load %arg3[%c0_6, %c0_7] : memref<32x32xf32, #tpu.memory_space<vmem>>, vector<32x32xf32>
    %cst_8 = arith.constant dense<0.000000e+00> : vector<8x32xf32>
    %9 = tpu.matmul %7, %8, %cst_8 {dimension_numbers = #tpu.dot_dimension_numbers<[1], [0], [0], [1], [0, 0, 1, 1], [], []>} : vector<8x32xf32>, vector<32x32xf32>, vector<8x32xf32> -> vector<8x32xf32>
    %c0_9 = arith.constant 0 : index
    %c0_10 = arith.constant 0 : index
    %10 = vector.load %arg4[%c0_9, %c0_10] : memref<1x32xf32, #tpu.memory_space<vmem>>, vector<1x32xf32>
    %11 = vector.broadcast %10 : vector<1x32xf32> to vector<8x32xf32>
    %12 = arith.addf %9, %11 : vector<8x32xf32>
    %cst_11 = arith.constant 0.000000e+00 : f32
    %13 = vector.broadcast %cst_11 : f32 to vector<8x32xf32>
    %14 = arith.maximumf %12, %13 : vector<8x32xf32>
    %c0_12 = arith.constant 0 : index
    %c0_13 = arith.constant 0 : index
    %15 = vector.load %arg5[%c0_12, %c0_13] : memref<32x16xf32, #tpu.memory_space<vmem>>, vector<32x16xf32>
    %cst_14 = arith.constant dense<0.000000e+00> : vector<8x16xf32>
    %16 = tpu.matmul %14, %15, %cst_14 {dimension_numbers = #tpu.dot_dimension_numbers<[1], [0], [0], [1], [0, 0, 1, 1], [], []>} : vector<8x32xf32>, vector<32x16xf32>, vector<8x16xf32> -> vector<8x16xf32>
    %c0_15 = arith.constant 0 : index
    %c0_16 = arith.constant 0 : index
    %17 = vector.load %arg6[%c0_15, %c0_16] : memref<1x16xf32, #tpu.memory_space<vmem>>, vector<1x16xf32>
    %18 = vector.broadcast %17 : vector<1x16xf32> to vector<8x16xf32>
    %19 = arith.addf %16, %18 : vector<8x16xf32>
    %20 = tpu.iota {dimensions = array<i32: 1>} : vector<8x16xi32>
    %cst_17 = arith.constant -2.000000e+01 : f32
    %cst_18 = arith.constant 2.000000e+00 : f32
    %21 = vector.broadcast %cst_17 : f32 to vector<8x16xf32>
    %22 = arith.maximumf %21, %19 : vector<8x16xf32>
    %23 = vector.broadcast %cst_18 : f32 to vector<8x16xf32>
    %24 = arith.minimumf %23, %22 : vector<8x16xf32>
    %c8_i32 = arith.constant 8 : i32
    %25 = vector.broadcast %c8_i32 : i32 to vector<8x16xi32>
    %26 = arith.cmpi sge, %20, %25 : vector<8x16xi32>
    %27 = arith.select %26, %24, %19 : vector<8x16xi1>, vector<8x16xf32>
    %c0_19 = arith.constant 0 : index
    %c0_20 = arith.constant 0 : index
    %28 = vector.load %arg7[%c0_19, %c0_20] : memref<8x16xf32, #tpu.memory_space<vmem>>, vector<8x16xf32>
    tpu.vector_store %arg7[%c0_19, %c0_20], %27 {strides = array<i32>} : memref<8x16xf32, #tpu.memory_space<vmem>>, vector<8x16xf32>,
    return
  }
}

</mosaic_0001>

<bundles_post_ra>
// kernel: tpu_custom_call.1
= control target key start
LH: loop header
LB: loop body
LE: loop exit
PB: predicated region body
PF: predicated region fallthrough
CT: control target
= control target key end

     0   :  { %12 = vsyncpa [#allocation3], 0  ;;  %s310_s0 = inlined_call_operand.hbm [shape: f32[8,16], index: 0, kind: input, shape index: {}]   ;;  %s311_s1 = inlined_call_operand.vmem [shape: f32[16,32], index: 1, kind: input, shape index: {}]   ;;  %s312_s2 = inlined_call_operand.vmem [shape: f32[1,32], index: 2, kind: input, shape index: {}]   ;;  %s313_s3 = inlined_call_operand.vmem [shape: f32[32,32], index: 3, kind: input, shape index: {}]   ;;  %s314_s4 = inlined_call_operand.vmem [shape: f32[1,32], index: 4, kind: input, shape index: {}]   ;;  %s315_s5 = inlined_call_operand.vmem [shape: f32[32,16], index: 5, kind: input, shape index: {}]   ;;  %s316_s6 = inlined_call_operand.vmem [shape: f32[1,16], index: 6, kind: input, shape index: {}]   ;;  %s317_s7 = inlined_call_operand.hbm [shape: f32[8,16], index: 7, kind: output, shape index: {}]  }
   0x1   :  { %13 = vsyncpa [#allocation4], 0  ;;  %s19_s26 = sshll.u32 %s310_s0, 4  ;;  %s221_s27 = smov [#allocation2]   ;;  %s20_s26 = int_to_ptr.hbm [resolvable:$true] %s19_s26 }
   0x2   :  { %s21_s28 = sshll.u32 %s221_s27, 4  ;;  %s22_s28 = int_to_ptr.vmem [resolvable:$true] %s21_s28 }
   0x3   :  { %24 = dma.hbm_to_vmem [thread:$0]  %s20_s26, 128, %s22_s28, [#allocation3]  }
   0x4   :  { %217 = dma.done.wait [#allocation3], 128  }
   0x5   :  { %218 = vsyncadd [#allocation3], 4294967168  ;;  %v43_v0 = vld [vmem:[%s311_s1 + $0x8] sm:$0xff]  ;;  %v42_v1 = vld [vmem:[%s311_s1] sm:$0xff]  ;;  %vm48_vm0 = vcmask 130048   ;;  %vm81_vm1 = vcmask 261120   ;;  %v137_v19 = vlaneseq }
   0x6   :  { %66 = vmatpush.msra.mxu0 %v43_v0  ;;  %v41_v2 = vld [vmem:[#allocation2] sm:$0xff]  ;;  %v76_v3 = vld [vmem:[%s313_s3 + $0x18] sm:$0xff]  ;;  %v75_v4 = vld [vmem:[%s313_s3 + $0x10] sm:$0xff]  ;;  %s222_s28 = smov [#allocation5]   ;;  %s151_s8 = sshll.u32 %s317_s7, 4  ;;  %s152_s8 = int_to_ptr.hbm [resolvable:$true] %s151_s8 }
   0x7   :  { %97 = vmatpush.msra.mxu1 %v76_v3  ;;  %v74_v5 = vld [vmem:[%s313_s3 + $0x8] sm:$0xff]  ;;  %v73_v6 = vld [vmem:[%s313_s3] sm:$0xff]  ;;  %v109_v7 = vld [vmem:[%s315_s5 + $0x18] sm:$0xff]  ;;  %v138_v22 = vand.u32 127, %v137_v19 }
   0x8   :  { %67 = vmatpush.msra.mxu0 %v42_v1  ;;  %129 = vmatpush.msra.mxu2 %v109_v7  ;;  %v166_v8 = vld [vmem:[%s312_s2] ss:$0 sm:$0xff]  ;;  %v108_v12 = vld [vmem:[%s315_s5 + $0x10] sm:$0xff]  ;;  %v107_v13 = vld [vmem:[%s315_s5 + $0x8] sm:$0xff] }
   0x9   :  { %161 = vmatmul.msk.f32.vlgmr.msra.gmra.mxu0 %vm48_vm0, %v41_v2  ;;  %98 = vmatpush.msra.mxu1 %v75_v4  ;;  %v106_v14 = vld [vmem:[%s315_s5] sm:$0xff]  ;;  %s149_s5 = sshll.u32 %s222_s28, 4  ;;  %vm141_vm2 = vcmp.ge.s32.totalorder %v138_v22, 8  ;;  %s150_s5 = int_to_ptr.vmem [resolvable:$true] %s149_s5 }
   0xa   :  { %130 = vmatpush.msra.mxu2 %v108_v12  ;;  %v167_v15 = vld [vmem:[%s314_s4] ss:$0 sm:$0xff] }
   0xb   :  { %99 = vmatpush.msra.mxu1 %v74_v5  ;;  %v168_v20 = vld [vmem:[%s316_s6] ss:$0 sm:$0xff] }
   0xc   :  { %131 = vmatpush.msra.mxu2 %v107_v13 }
   0xd   :  { %100 = vmatpush.msra.mxu1 %v73_v6 }
   0xe   :  { %132 = vmatpush.msra.mxu2 %v106_v14 }
  0x86   :  { %v69_v9 = vpop.f32.mrf.mxu0 }
  0x87   :  { %v70_v10 = vadd.f32 %v166_v8, %v69_v9 }
  0x89   :  { %v72_v11 = vmax.f32 %v70_v10, 0.0 }
  0x8b   :  { %162 = vmatmul.msk.f32.vlgmr.msra.gmra.mxu1 %vm81_vm1, %v72_v11 }
 0x108   :  { %v102_v16 = vpop.f32.mrf.mxu1 }
 0x109   :  { %v103_v17 = vadd.f32 %v167_v15, %v102_v16 }
 0x10b   :  { %v105_v18 = vmax.f32 %v103_v17, 0.0 }
 0x10d   :  { %163 = vmatmul.msk.f32.vlgmr.msra.gmra.mxu2 %vm81_vm1, %v105_v18 }
 0x190   :  { %v134_v21 = vpop.f32.mrf.mxu2 }
 0x191   :  { %v135_v23 = vadd.f32 %v168_v20, %v134_v21 }
 0x193   :  { %v139_v24 = vmax.f32 %v135_v23, -20.0 }
 0x195   :  { %v140_v25 = vmin.f32 %v139_v24, 2.0 }
 0x197   :  { %v142_v26 = vsel %vm141_vm2, %v140_v25, %v135_v23 }
 0x198   :  { %143 = vst.msk [vmem:[#allocation5] sm:$0xff] %vm48_vm0, %v142_v26 }
 0x199   :  { %154 = dma.vmem_to_hbm [thread:$0]  %s150_s5, 128, %s152_s8, [#allocation4]  }
 0x19a   :  { %219 = dma.done.wait [#allocation4], 128  }
 0x19b   :  { %220 = vsyncadd [#allocation4], 4294967168 }
 0x19c   :  { %159 = vsyncpa [#allocation3], 1 }
 0x19d   :  { %160 = vsyncpa [#allocation4], 1 }

</bundles_post_ra>
